<compile_context>
chip_gen: v6e
topology: v6e:2x2x1
jax: 0.10.0
libtpu: 0.0.40
codegen_flags: <defaults>
</compile_context>

<pallas_src>
import functools
import math

import jax
import jax.numpy as jnp
from jax import lax
from jax.experimental import pallas as pl
from jax.experimental.pallas import tpu as pltpu


def _round_up(x, m):
    return ((x + m - 1) // m) * m


def _pick_seq_tile(s, target):
    """Largest multiple-of-16 divisor of s that is <= target (or s itself)."""
    if s <= target:
        return s
    t = (target // 16) * 16
    while t >= 16:
        if s % t == 0:
            return t
        t -= 16
    return s


# --------------------- Pass 1: fused QKV projection ---------------------

def _qkv_proj_kernel(x_ref, wqkv_ref, bqkv_ref, q_ref, k_ref, v_ref, *, cp, scale):
    x = x_ref[0].astype(jnp.bfloat16)                               # (ts, Cp)
    qkv = jnp.dot(x, wqkv_ref[...],                                 # one wide MXU pass
                  preferred_element_type=jnp.float32) + bqkv_ref[...]
    q_ref[0] = (qkv[:, :cp] * scale).astype(q_ref.dtype)            # pre-scaled q
    k_ref[0] = qkv[:, cp:2 * cp].astype(k_ref.dtype)
    v_ref[0] = qkv[:, 2 * cp:].astype(v_ref.dtype)


# --------------- Pass 2: flash attention + out_proj + residual ---------------

def _flash_attn_kernel(q_ref, k_ref, v_ref, xres_ref, wo_ref, bo_ref, o_ref,
                       m_sc, l_sc, acc_sc):
    ki = pl.program_id(2)

    @pl.when(ki == 0)
    def _():
        m_sc[...] = jnp.full_like(m_sc, -jnp.inf)
        l_sc[...] = jnp.zeros_like(l_sc)
        acc_sc[...] = jnp.zeros_like(acc_sc)

    q = q_ref[0]                                                    # (tq, Cp) bf16
    k = k_ref[0]                                                    # (tk, Cp) bf16
    # Contract over the channel axis directly (no materialized k.T).
    scores = lax.dot_general(q, k, dimension_numbers=(((1,), (1,)), ((), ())),
                             preferred_element_type=jnp.float32)    # (tq, tk) f32

    m_prev = m_sc[...]
    m_new = jnp.maximum(m_prev, jnp.max(scores, axis=-1, keepdims=True))
    alpha = jnp.exp(m_prev - m_new)
    p = jnp.exp(scores - m_new)
    l_sc[...] = alpha * l_sc[...] + jnp.sum(p, axis=-1, keepdims=True)
    acc_sc[...] = alpha * acc_sc[...] + jnp.dot(
        p.astype(jnp.bfloat16), v_ref[0], preferred_element_type=jnp.float32)
    m_sc[...] = m_new

    @pl.when(ki == pl.num_programs(2) - 1)
    def _():
        attn = acc_sc[...] * pl.reciprocal(l_sc[...], approx=True)  # (tq, Cp) f32
        out = jnp.dot(attn.astype(jnp.bfloat16), wo_ref[...],
                      preferred_element_type=jnp.float32) + bo_ref[...]
        o_ref[0] = (out + xres_ref[0]).astype(o_ref.dtype)          # residual add


# ------------------------------- wrapper -------------------------------

def vae_attention_block(x_nchw, params):
    """x_nchw: (N, C, H, W) float32. Returns (N, C, H, W)."""
    n, c, h, w = x_nchw.shape
    s = h * w
    cp = _round_up(c, 128)       # lane-dense channel axis
    pad_c = cp - c

    # NCHW -> (N, S, Cp).
    # TODO(synk): fold this transpose into the BlockSpec index_map to avoid the
    # extra HBM round trip of the full activation.
    x_nsc = jnp.transpose(x_nchw.reshape(n, c, s), (0, 2, 1))
    if pad_c:
        x_nsc = jnp.pad(x_nsc, ((0, 0), (0, 0), (0, pad_c)))

    def pad_w(m):   # (C, C) -> (Cp, Cp), zero padding keeps the math exact
        return jnp.pad(m, ((0, pad_c), (0, pad_c)))

    def pad_b(b):   # (C,) -> (1, Cp)
        return jnp.pad(b, (0, pad_c)).reshape(1, cp)

    # Fused QKV weight (Cp, 3Cp) in bf16 (MXU-native); biases stay f32.
    w_qkv = jnp.concatenate(
        [pad_w(params["wq"]), pad_w(params["wk"]), pad_w(params["wv"])],
        axis=1).astype(jnp.bfloat16)
    b_qkv = jnp.concatenate(
        [pad_b(params["bq"]), pad_b(params["bk"]), pad_b(params["bv"])], axis=1)
    wo = pad_w(params["wo"]).astype(jnp.bfloat16)
    bo = pad_b(params["bo"])

    scale = 1.0 / math.sqrt(c)   # n_heads = 1 -> d_head = C (true channel count)

    ts = _pick_seq_tile(s, 512)   # projection sequence tile
    tq = _pick_seq_tile(s, 256)   # flash q tile (256-multiples fill v6e/v7x MXU)
    tk = _pick_seq_tile(s, 256)   # flash kv tile
    n_s, n_q, n_kv = s // ts, s // tq, s // tk

    vmem_limit = 48 * 1024 * 1024  # fits v5e/v6e (128 MiB) and v7x (64 MiB)

    # ---------------- Pass 1: fused QKV projection ----------------
    qkv_cost = pl.CostEstimate(
        flops=2 * n * s * cp * 3 * cp,
        transcendentals=0,
        bytes_accessed=n * s * cp * 4 + cp * 3 * cp * 2 + 3 * n * s * cp * 2)
    q, k, v = pl.pallas_call(
        functools.partial(_qkv_proj_kernel, cp=cp, scale=scale),
        out_shape=tuple(jax.ShapeDtypeStruct((n, s, cp), jnp.bfloat16)
                        for _ in range(3)),
        grid_spec=pltpu.PrefetchScalarGridSpec(
            num_scalar_prefetch=0,
            grid=(n, n_s),
            in_specs=[
                pl.BlockSpec((1, ts, cp), lambda b, i: (b, i, 0)),   # x tile
                pl.BlockSpec((cp, 3 * cp), lambda b, i: (0, 0)),     # Wqkv (resident)
                pl.BlockSpec((1, 3 * cp), lambda b, i: (0, 0)),      # bqkv (resident)
            ],
            out_specs=[pl.BlockSpec((1, ts, cp), lambda b, i: (b, i, 0))] * 3,
        ),
        compiler_params=pltpu.CompilerParams(
            dimension_semantics=("parallel", "parallel"),
            vmem_limit_bytes=vmem_limit),
        cost_estimate=qkv_cost,
    )(x_nsc, w_qkv, b_qkv)

    # -------- Pass 2: flash attention + out_proj + residual --------
    attn_cost = pl.CostEstimate(
        flops=n * (4 * s * s * cp + 2 * s * cp * cp),
        transcendentals=n * s * s,
        bytes_accessed=(n * s * cp * 2              # q
                        + 2 * n * s * cp * 2 * n_q  # k, v re-read per q tile
                        + 2 * n * s * cp * 4        # residual x + output
                        + cp * cp * 2))             # Wo
    out_p = pl.pallas_call(
        _flash_attn_kernel,
        out_shape=jax.ShapeDtypeStruct((n, s, cp), x_nchw.dtype),
        grid_spec=pltpu.PrefetchScalarGridSpec(
            num_scalar_prefetch=0,
            grid=(n, n_q, n_kv),
            in_specs=[
                pl.BlockSpec((1, tq, cp), lambda b, qi, ki: (b, qi, 0)),  # q
                pl.BlockSpec((1, tk, cp), lambda b, qi, ki: (b, ki, 0)),  # k
                pl.BlockSpec((1, tk, cp), lambda b, qi, ki: (b, ki, 0)),  # v
                pl.BlockSpec((1, tq, cp), lambda b, qi, ki: (b, qi, 0)),  # residual x
                pl.BlockSpec((cp, cp), lambda b, qi, ki: (0, 0)),         # Wo (resident)
                pl.BlockSpec((1, cp), lambda b, qi, ki: (0, 0)),          # bo (resident)
            ],
            out_specs=pl.BlockSpec((1, tq, cp), lambda b, qi, ki: (b, qi, 0)),
            scratch_shapes=[
                pltpu.VMEM((tq, 1), jnp.float32),    # running max
                pltpu.VMEM((tq, 1), jnp.float32),    # running sum
                pltpu.VMEM((tq, cp), jnp.float32),   # output accumulator
            ],
        ),
        compiler_params=pltpu.CompilerParams(
            dimension_semantics=("parallel", "parallel", "arbitrary"),
            vmem_limit_bytes=vmem_limit),
        cost_estimate=attn_cost,
    )(q, k, v, x_nsc, wo, bo)

    out_nsc = out_p[:, :, :c] if pad_c else out_p
    # (N, S, C) -> (N, C, H, W)
    return jnp.transpose(out_nsc, (0, 2, 1)).reshape(n, c, h, w)


# ------------------------------ params / reference ------------------------------

def init_params(key, channels):
    """Matches nn.Linear(C, 3C) in_proj and nn.Linear(C, C) out_proj.

    PyTorch Linear stores weight as (out, in) and computes y = x @ W.T + b.
    We pre-transpose so the kernel can do y = x @ W + b.
    """
    c = channels
    k = jax.random.split(key, 6)
    bound_in = 1.0 / math.sqrt(c)
    in_proj_w = jax.random.uniform(k[0], (3 * c, c), jnp.float32, -bound_in, bound_in)
    in_proj_b = jax.random.uniform(k[1], (3 * c,), jnp.float32, -bound_in, bound_in)
    out_proj_w = jax.random.uniform(k[2], (c, c), jnp.float32, -bound_in, bound_in)
    out_proj_b = jax.random.uniform(k[3], (c,), jnp.float32, -bound_in, bound_in)

    # GroupNorm(32, C) params exist on the module but forward() never calls it.
    gn_gamma = jnp.ones((c,), jnp.float32)
    gn_beta = jnp.zeros((c,), jnp.float32)

    return {
        "wq": in_proj_w[0 * c:1 * c].T, "wk": in_proj_w[1 * c:2 * c].T,
        "wv": in_proj_w[2 * c:3 * c].T, "wo": out_proj_w.T,
        "bq": in_proj_b[0 * c:1 * c],
        "bk": in_proj_b[1 * c:2 * c],
        "bv": in_proj_b[2 * c:3 * c],
        "bo": out_proj_b,
        "gn_gamma": gn_gamma, "gn_beta": gn_beta,  # unused by forward()
    }


def _reference(x_nchw, params):
    """Pure-JAX f32 reference of the exact PyTorch forward (no groupnorm applied)."""
    n, c, h, w = x_nchw.shape
    x = jnp.transpose(x_nchw.reshape(n, c, h * w), (0, 2, 1))
    q = x @ params["wq"] + params["bq"]
    k = x @ params["wk"] + params["bk"]
    v = x @ params["wv"] + params["bv"]
    scores = jnp.einsum("nsc,ntc->nst", q, k) / math.sqrt(c)
    p = jax.nn.softmax(scores, axis=-1)
    out = jnp.einsum("nst,ntc->nsc", p, v) @ params["wo"] + params["bo"]
    out = out + x
    return jnp.transpose(out, (0, 2, 1)).reshape(n, c, h, w)


if __name__ == "__main__":
    key = jax.random.PRNGKey(0)
    kx, kp = jax.random.split(key)

    N, C, H, W = 2, 32, 8, 8   # C=32 so GroupNorm(32, C) in __init__ is valid
    x = jax.random.normal(kx, (N, C, H, W), jnp.float32)
    params = init_params(kp, C)

    fwd = jax.jit(vae_attention_block)
    out = jax.block_until_ready(fwd(x, params))

    ref = _reference(x, params)
    assert out.shape == (N, C, H, W)
    max_err = float(jnp.max(jnp.abs(out - ref)))
    # bf16 MXU operands + approx reciprocal -> relaxed (but still tight) tolerance.
    assert jnp.allclose(out, ref, atol=5e-2, rtol=5e-2), f"mismatch vs reference, max err {max_err}"

    print("KERNEL_OK")
</pallas_src>

<mosaic_0001>
module attributes {stable_mosaic.version = 11 : i64} {
  func.func @_qkv_proj_kernel(%arg0: i32, %arg1: i32, %arg2: memref<1x64x128xf32, #tpu.memory_space<vmem>>, %arg3: memref<128x384xbf16, #tpu.memory_space<vmem>>, %arg4: memref<1x384xf32, #tpu.memory_space<vmem>>, %arg5: memref<1x64x128xbf16, #tpu.memory_space<vmem>>, %arg6: memref<1x64x128xbf16, #tpu.memory_space<vmem>>, %arg7: memref<1x64x128xbf16, #tpu.memory_space<vmem>>) attributes {dimension_semantics = [#tpu.dimension_semantics<parallel>, #tpu.dimension_semantics<parallel>], iteration_bounds = array<i64: 2, 1>, scalar_prefetch = 0 : i64, scratch_operands = 0 : i64, tpu.core_type = #tpu.core_type<tc>, window_params = [{transform_indices = @transform_0, window_bounds = array<i64: 1, 64, 128>}, {pipeline_mode = #tpu.pipeline_mode<synchronous>, transform_indices = @transform_1, window_bounds = array<i64: 128, 384>}, {pipeline_mode = #tpu.pipeline_mode<synchronous>, transform_indices = @transform_2, window_bounds = array<i64: 1, 384>}, {transform_indices = @transform_3, window_bounds = array<i64: 1, 64, 128>}, {transform_indices = @transform_4, window_bounds = array<i64: 1, 64, 128>}, {transform_indices = @transform_5, window_bounds = array<i64: 1, 64, 128>}]} {
    %c0 = arith.constant 0 : index
    %c0_0 = arith.constant 0 : index
    %c0_1 = arith.constant 0 : index
    %0 = vector.load %arg2[%c0, %c0_0, %c0_1] : memref<1x64x128xf32, #tpu.memory_space<vmem>>, vector<1x64x128xf32>
    %1 = vector.shape_cast %0 : vector<1x64x128xf32> to vector<64x128xf32>
    %2 = arith.truncf %1 : vector<64x128xf32> to vector<64x128xbf16>
    %c0_2 = arith.constant 0 : index
    %c0_3 = arith.constant 0 : index
    %3 = vector.load %arg3[%c0_2, %c0_3] : memref<128x384xbf16, #tpu.memory_space<vmem>>, vector<128x384xbf16>
    %cst = arith.constant dense<0.000000e+00> : vector<64x384xf32>
    %4 = tpu.matmul %2, %3, %cst {dimension_numbers = #tpu.dot_dimension_numbers<[1], [0], [0], [1], [0, 0, 1, 1], [], []>} : vector<64x128xbf16>, vector<128x384xbf16>, vector<64x384xf32> -> vector<64x384xf32>
    %c0_4 = arith.constant 0 : index
    %c0_5 = arith.constant 0 : index
    %5 = vector.load %arg4[%c0_4, %c0_5] : memref<1x384xf32, #tpu.memory_space<vmem>>, vector<1x384xf32>
    %6 = vector.broadcast %5 : vector<1x384xf32> to vector<64x384xf32>
    %7 = arith.addf %4, %6 : vector<64x384xf32>
    %8 = vector.extract_strided_slice %7 {offsets = [0, 0], sizes = [64, 128], strides = [1, 1]} : vector<64x384xf32> to vector<64x128xf32>
    %cst_6 = arith.constant 0.176776692 : f32
    %9 = vector.broadcast %cst_6 : f32 to vector<64x128xf32>
    %10 = arith.mulf %8, %9 : vector<64x128xf32>
    %11 = arith.truncf %10 : vector<64x128xf32> to vector<64x128xbf16>
    %c0_7 = arith.constant 0 : index
    %c0_8 = arith.constant 0 : index
    %c0_9 = arith.constant 0 : index
    %12 = vector.load %arg5[%c0_7, %c0_8, %c0_9] : memref<1x64x128xbf16, #tpu.memory_space<vmem>>, vector<1x64x128xbf16>
    %13 = vector.shape_cast %12 : vector<1x64x128xbf16> to vector<64x128xbf16>
    %14 = vector.shape_cast %11 : vector<64x128xbf16> to vector<1x64x128xbf16>
    tpu.vector_store %arg5[%c0_7, %c0_8, %c0_9], %14 {strides = array<i32>} : memref<1x64x128xbf16, #tpu.memory_space<vmem>>, vector<1x64x128xbf16>,
    %15 = vector.extract_strided_slice %7 {offsets = [0, 128], sizes = [64, 128], strides = [1, 1]} : vector<64x384xf32> to vector<64x128xf32>
    %16 = arith.truncf %15 : vector<64x128xf32> to vector<64x128xbf16>
    %c0_10 = arith.constant 0 : index
    %c0_11 = arith.constant 0 : index
    %c0_12 = arith.constant 0 : index
    %17 = vector.load %arg6[%c0_10, %c0_11, %c0_12] : memref<1x64x128xbf16, #tpu.memory_space<vmem>>, vector<1x64x128xbf16>
    %18 = vector.shape_cast %17 : vector<1x64x128xbf16> to vector<64x128xbf16>
    %19 = vector.shape_cast %16 : vector<64x128xbf16> to vector<1x64x128xbf16>
    tpu.vector_store %arg6[%c0_10, %c0_11, %c0_12], %19 {strides = array<i32>} : memref<1x64x128xbf16, #tpu.memory_space<vmem>>, vector<1x64x128xbf16>,
    %20 = vector.extract_strided_slice %7 {offsets = [0, 256], sizes = [64, 128], strides = [1, 1]} : vector<64x384xf32> to vector<64x128xf32>
    %21 = arith.truncf %20 : vector<64x128xf32> to vector<64x128xbf16>
    %c0_13 = arith.constant 0 : index
    %c0_14 = arith.constant 0 : index
    %c0_15 = arith.constant 0 : index
    %22 = vector.load %arg7[%c0_13, %c0_14, %c0_15] : memref<1x64x128xbf16, #tpu.memory_space<vmem>>, vector<1x64x128xbf16>
    %23 = vector.shape_cast %22 : vector<1x64x128xbf16> to vector<64x128xbf16>
    %24 = vector.shape_cast %21 : vector<64x128xbf16> to vector<1x64x128xbf16>
    tpu.vector_store %arg7[%c0_13, %c0_14, %c0_15], %24 {strides = array<i32>} : memref<1x64x128xbf16, #tpu.memory_space<vmem>>, vector<1x64x128xbf16>,
    return
  }
  func.func @transform_0(%arg0: i32, %arg1: i32) -> (i32, i32, i32) {
    %c0_i32 = arith.constant 0 : i32
    %c0_i32_0 = arith.constant 0 : i32
    return %arg0, %arg1, %c0_i32 : i32, i32, i32
  }
  func.func @transform_1(%arg0: i32, %arg1: i32) -> (i32, i32) {
    %c0_i32 = arith.constant 0 : i32
    %c0_i32_0 = arith.constant 0 : i32
    %c0_i32_1 = arith.constant 0 : i32
    return %c0_i32, %c0_i32_0 : i32, i32
  }
  func.func @transform_2(%arg0: i32, %arg1: i32) -> (i32, i32) {
    %c0_i32 = arith.constant 0 : i32
    %c0_i32_0 = arith.constant 0 : i32
    %c0_i32_1 = arith.constant 0 : i32
    return %c0_i32, %c0_i32_0 : i32, i32
  }
  func.func @transform_3(%arg0: i32, %arg1: i32) -> (i32, i32, i32) {
    %c0_i32 = arith.constant 0 : i32
    %c0_i32_0 = arith.constant 0 : i32
    return %arg0, %arg1, %c0_i32 : i32, i32, i32
  }
  func.func @transform_4(%arg0: i32, %arg1: i32) -> (i32, i32, i32) {
    %c0_i32 = arith.constant 0 : i32
    %c0_i32_0 = arith.constant 0 : i32
    return %arg0, %arg1, %c0_i32 : i32, i32, i32
  }
  func.func @transform_5(%arg0: i32, %arg1: i32) -> (i32, i32, i32) {
    %c0_i32 = arith.constant 0 : i32
    %c0_i32_0 = arith.constant 0 : i32
    return %arg0, %arg1, %c0_i32 : i32, i32, i32
  }
}

module attributes {stable_mosaic.version = 11 : i64} {
  func.func @_flash_attn_kernel(%arg0: i32, %arg1: i32, %arg2: i32, %arg3: memref<1x64x128xbf16, #tpu.memory_space<vmem>>, %arg4: memref<1x64x128xbf16, #tpu.memory_space<vmem>>, %arg5: memref<1x64x128xbf16, #tpu.memory_space<vmem>>, %arg6: memref<1x64x128xf32, #tpu.memory_space<vmem>>, %arg7: memref<128x128xbf16, #tpu.memory_space<vmem>>, %arg8: memref<1x128xf32, #tpu.memory_space<vmem>>, %arg9: memref<1x64x128xf32, #tpu.memory_space<vmem>>, %arg10: memref<64x1xf32, #tpu.memory_space<vmem>>, %arg11: memref<64x1xf32, #tpu.memory_space<vmem>>, %arg12: memref<64x128xf32, #tpu.memory_space<vmem>>) attributes {dimension_semantics = [#tpu.dimension_semantics<parallel>, #tpu.dimension_semantics<parallel>, #tpu.dimension_semantics<arbitrary>], iteration_bounds = array<i64: 2, 1, 1>, scalar_prefetch = 0 : i64, scratch_operands = 3 : i64, tpu.core_type = #tpu.core_type<tc>, window_params = [{transform_indices = @transform_0, window_bounds = array<i64: 1, 64, 128>}, {transform_indices = @transform_1, window_bounds = array<i64: 1, 64, 128>}, {transform_indices = @transform_2, window_bounds = array<i64: 1, 64, 128>}, {transform_indices = @transform_3, window_bounds = array<i64: 1, 64, 128>}, {pipeline_mode = #tpu.pipeline_mode<synchronous>, transform_indices = @transform_4, window_bounds = array<i64: 128, 128>}, {pipeline_mode = #tpu.pipeline_mode<synchronous>, transform_indices = @transform_5, window_bounds = array<i64: 1, 128>}, {transform_indices = @transform_6, window_bounds = array<i64: 1, 64, 128>}]} {
    %c0_i32 = arith.constant 0 : i32
    %0 = arith.cmpi eq, %arg2, %c0_i32 : i32
    %1 = arith.extui %0 : i1 to i32
    %c0_i32_0 = arith.constant 0 : i32
    %2 = arith.cmpi ne, %1, %c0_i32_0 : i32
    scf.if %2 {
      %cst_26 = arith.constant 0xFF800000 : f32
      %36 = vector.broadcast %cst_26 : f32 to vector<64x1xf32>
      %c0_27 = arith.constant 0 : index
      %c0_28 = arith.constant 0 : index
      %37 = vector.load %arg10[%c0_27, %c0_28] : memref<64x1xf32, #tpu.memory_space<vmem>>, vector<64x1xf32>
      tpu.vector_store %arg10[%c0_27, %c0_28], %36 {strides = array<i32>} : memref<64x1xf32, #tpu.memory_space<vmem>>, vector<64x1xf32>,
      %cst_29 = arith.constant 0.000000e+00 : f32
      %38 = vector.broadcast %cst_29 : f32 to vector<64x1xf32>
      %c0_30 = arith.constant 0 : index
      %c0_31 = arith.constant 0 : index
      %39 = vector.load %arg11[%c0_30, %c0_31] : memref<64x1xf32, #tpu.memory_space<vmem>>, vector<64x1xf32>
      tpu.vector_store %arg11[%c0_30, %c0_31], %38 {strides = array<i32>} : memref<64x1xf32, #tpu.memory_space<vmem>>, vector<64x1xf32>,
      %cst_32 = arith.constant 0.000000e+00 : f32
      %40 = vector.broadcast %cst_32 : f32 to vector<64x128xf32>
      %c0_33 = arith.constant 0 : index
      %c0_34 = arith.constant 0 : index
      %41 = vector.load %arg12[%c0_33, %c0_34] : memref<64x128xf32, #tpu.memory_space<vmem>>, vector<64x128xf32>
      tpu.vector_store %arg12[%c0_33, %c0_34], %40 {strides = array<i32>} : memref<64x128xf32, #tpu.memory_space<vmem>>, vector<64x128xf32>,
    } else {
    }
    %c0 = arith.constant 0 : index
    %c0_1 = arith.constant 0 : index
    %c0_2 = arith.constant 0 : index
    %3 = vector.load %arg3[%c0, %c0_1, %c0_2] : memref<1x64x128xbf16, #tpu.memory_space<vmem>>, vector<1x64x128xbf16>
    %4 = vector.shape_cast %3 : vector<1x64x128xbf16> to vector<64x128xbf16>
    %c0_3 = arith.constant 0 : index
    %c0_4 = arith.constant 0 : index
    %c0_5 = arith.constant 0 : index
    %5 = vector.load %arg4[%c0_3, %c0_4, %c0_5] : memref<1x64x128xbf16, #tpu.memory_space<vmem>>, vector<1x64x128xbf16>
    %6 = vector.shape_cast %5 : vector<1x64x128xbf16> to vector<64x128xbf16>
    %cst = arith.constant dense<0.000000e+00> : vector<64x64xf32>
    %7 = tpu.matmul %4, %6, %cst {dimension_numbers = #tpu.dot_dimension_numbers<[1], [1], [0], [0], [0, 0, 1, 0], [], []>} : vector<64x128xbf16>, vector<64x128xbf16>, vector<64x64xf32> -> vector<64x64xf32>
    %c0_6 = arith.constant 0 : index
    %c0_7 = arith.constant 0 : index
    %8 = vector.load %arg10[%c0_6, %c0_7] : memref<64x1xf32, #tpu.memory_space<vmem>>, vector<64x1xf32>
    %cst_8 = arith.constant dense<0xFF800000> : vector<64xf32>
    %9 = vector.multi_reduction <maximumf>, %7, %cst_8 [1] : vector<64x64xf32> to vector<64xf32>
    %10 = vector.shape_cast %9 : vector<64xf32> to vector<64x1xf32>
    %11 = arith.maximumf %8, %10 : vector<64x1xf32>
    %12 = arith.subf %8, %11 : vector<64x1xf32>
    %13 = math.exp %12 : vector<64x1xf32>
    %14 = vector.broadcast %11 : vector<64x1xf32> to vector<64x64xf32>
    %15 = arith.subf %7, %14 : vector<64x64xf32>
    %16 = math.exp %15 : vector<64x64xf32>
    %c0_9 = arith.constant 0 : index
    %c0_10 = arith.constant 0 : index
    %17 = vector.load %arg11[%c0_9, %c0_10] : memref<64x1xf32, #tpu.memory_space<vmem>>, vector<64x1xf32>
    %18 = arith.mulf %13, %17 : vector<64x1xf32>
    %cst_11 = arith.constant dense<0.000000e+00> : vector<64xf32>
    %19 = vector.multi_reduction <add>, %16, %cst_11 [1] : vector<64x64xf32> to vector<64xf32>
    %20 = vector.shape_cast %19 : vector<64xf32> to vector<64x1xf32>
    %21 = arith.addf %18, %20 : vector<64x1xf32>
    %c0_12 = arith.constant 0 : index
    %c0_13 = arith.constant 0 : index
    %22 = vector.load %arg11[%c0_12, %c0_13] : memref<64x1xf32, #tpu.memory_space<vmem>>, vector<64x1xf32>
    tpu.vector_store %arg11[%c0_12, %c0_13], %21 {strides = array<i32>} : memref<64x1xf32, #tpu.memory_space<vmem>>, vector<64x1xf32>,
    %c0_14 = arith.constant 0 : index
    %c0_15 = arith.constant 0 : index
    %23 = vector.load %arg12[%c0_14, %c0_15] : memref<64x128xf32, #tpu.memory_space<vmem>>, vector<64x128xf32>
    %24 = vector.broadcast %13 : vector<64x1xf32> to vector<64x128xf32>
    %25 = arith.mulf %24, %23 : vector<64x128xf32>
    %26 = arith.truncf %16 : vector<64x64xf32> to vector<64x64xbf16>
    %c0_16 = arith.constant 0 : index
    %c0_17 = arith.constant 0 : index
    %c0_18 = arith.constant 0 : index
    %27 = vector.load %arg5[%c0_16, %c0_17, %c0_18] : memref<1x64x128xbf16, #tpu.memory_space<vmem>>, vector<1x64x128xbf16>
    %28 = vector.shape_cast %27 : vector<1x64x128xbf16> to vector<64x128xbf16>
    %cst_19 = arith.constant dense<0.000000e+00> : vector<64x128xf32>
    %29 = tpu.matmul %26, %28, %cst_19 {dimension_numbers = #tpu.dot_dimension_numbers<[1], [0], [0], [1], [0, 0, 1, 1], [], []>} : vector<64x64xbf16>, vector<64x128xbf16>, vector<64x128xf32> -> vector<64x128xf32>
    %30 = arith.addf %25, %29 : vector<64x128xf32>
    %c0_20 = arith.constant 0 : index
    %c0_21 = arith.constant 0 : index
    %31 = vector.load %arg12[%c0_20, %c0_21] : memref<64x128xf32, #tpu.memory_space<vmem>>, vector<64x128xf32>
    tpu.vector_store %arg12[%c0_20, %c0_21], %30 {strides = array<i32>} : memref<64x128xf32, #tpu.memory_space<vmem>>, vector<64x128xf32>,
    %c0_22 = arith.constant 0 : index
    %c0_23 = arith.constant 0 : index
    %32 = vector.load %arg10[%c0_22, %c0_23] : memref<64x1xf32, #tpu.memory_space<vmem>>, vector<64x1xf32>
    tpu.vector_store %arg10[%c0_22, %c0_23], %11 {strides = array<i32>} : memref<64x1xf32, #tpu.memory_space<vmem>>, vector<64x1xf32>,
    %c0_i32_24 = arith.constant 0 : i32
    %33 = arith.cmpi eq, %arg2, %c0_i32_24 : i32
    %34 = arith.extui %33 : i1 to i32
    %c0_i32_25 = arith.constant 0 : i32
    %35 = arith.cmpi ne, %34, %c0_i32_25 : i32
    scf.if %35 {
      %c0_26 = arith.constant 0 : index
      %c0_27 = arith.constant 0 : index
      %36 = vector.load %arg12[%c0_26, %c0_27] : memref<64x128xf32, #tpu.memory_space<vmem>>, vector<64x128xf32>
      %c0_28 = arith.constant 0 : index
      %c0_29 = arith.constant 0 : index
      %37 = vector.load %arg11[%c0_28, %c0_29] : memref<64x1xf32, #tpu.memory_space<vmem>>, vector<64x1xf32>
      %38 = tpu.reciprocal %37 {approx = true} : vector<64x1xf32> -> vector<64x1xf32>
      %39 = vector.broadcast %38 : vector<64x1xf32> to vector<64x128xf32>
      %40 = arith.mulf %36, %39 : vector<64x128xf32>
      %41 = arith.truncf %40 : vector<64x128xf32> to vector<64x128xbf16>
      %c0_30 = arith.constant 0 : index
      %c0_31 = arith.constant 0 : index
      %42 = vector.load %arg7[%c0_30, %c0_31] : memref<128x128xbf16, #tpu.memory_space<vmem>>, vector<128x128xbf16>
      %cst_32 = arith.constant dense<0.000000e+00> : vector<64x128xf32>
      %43 = tpu.matmul %41, %42, %cst_32 {dimension_numbers = #tpu.dot_dimension_numbers<[1], [0], [0], [1], [0, 0, 1, 1], [], []>} : vector<64x128xbf16>, vector<128x128xbf16>, vector<64x128xf32> -> vector<64x128xf32>
      %c0_33 = arith.constant 0 : index
      %c0_34 = arith.constant 0 : index
      %44 = vector.load %arg8[%c0_33, %c0_34] : memref<1x128xf32, #tpu.memory_space<vmem>>, vector<1x128xf32>
      %45 = vector.broadcast %44 : vector<1x128xf32> to vector<64x128xf32>
      %46 = arith.addf %43, %45 : vector<64x128xf32>
      %c0_35 = arith.constant 0 : index
      %c0_36 = arith.constant 0 : index
      %c0_37 = arith.constant 0 : index
      %47 = vector.load %arg6[%c0_35, %c0_36, %c0_37] : memref<1x64x128xf32, #tpu.memory_space<vmem>>, vector<1x64x128xf32>
      %48 = vector.shape_cast %47 : vector<1x64x128xf32> to vector<64x128xf32>
      %49 = arith.addf %46, %48 : vector<64x128xf32>
      %c0_38 = arith.constant 0 : index
      %c0_39 = arith.constant 0 : index
      %c0_40 = arith.constant 0 : index
      %50 = vector.load %arg9[%c0_38, %c0_39, %c0_40] : memref<1x64x128xf32, #tpu.memory_space<vmem>>, vector<1x64x128xf32>
      %51 = vector.shape_cast %50 : vector<1x64x128xf32> to vector<64x128xf32>
      %52 = vector.shape_cast %49 : vector<64x128xf32> to vector<1x64x128xf32>
      tpu.vector_store %arg9[%c0_38, %c0_39, %c0_40], %52 {strides = array<i32>} : memref<1x64x128xf32, #tpu.memory_space<vmem>>, vector<1x64x128xf32>,
    } else {
    }
    return
  }
  func.func @transform_0(%arg0: i32, %arg1: i32, %arg2: i32) -> (i32, i32, i32) {
    %c0_i32 = arith.constant 0 : i32
    %c0_i32_0 = arith.constant 0 : i32
    return %arg0, %arg1, %c0_i32 : i32, i32, i32
  }
  func.func @transform_1(%arg0: i32, %arg1: i32, %arg2: i32) -> (i32, i32, i32) {
    %c0_i32 = arith.constant 0 : i32
    %c0_i32_0 = arith.constant 0 : i32
    return %arg0, %arg2, %c0_i32 : i32, i32, i32
  }
  func.func @transform_2(%arg0: i32, %arg1: i32, %arg2: i32) -> (i32, i32, i32) {
    %c0_i32 = arith.constant 0 : i32
    %c0_i32_0 = arith.constant 0 : i32
    return %arg0, %arg2, %c0_i32 : i32, i32, i32
  }
  func.func @transform_3(%arg0: i32, %arg1: i32, %arg2: i32) -> (i32, i32, i32) {
    %c0_i32 = arith.constant 0 : i32
    %c0_i32_0 = arith.constant 0 : i32
    return %arg0, %arg1, %c0_i32 : i32, i32, i32
  }
  func.func @transform_4(%arg0: i32, %arg1: i32, %arg2: i32) -> (i32, i32) {
    %c0_i32 = arith.constant 0 : i32
    %c0_i32_0 = arith.constant 0 : i32
    %c0_i32_1 = arith.constant 0 : i32
    return %c0_i32, %c0_i32_0 : i32, i32
  }
  func.func @transform_5(%arg0: i32, %arg1: i32, %arg2: i32) -> (i32, i32) {
    %c0_i32 = arith.constant 0 : i32
    %c0_i32_0 = arith.constant 0 : i32
    %c0_i32_1 = arith.constant 0 : i32
    return %c0_i32, %c0_i32_0 : i32, i32
  }
  func.func @transform_6(%arg0: i32, %arg1: i32, %arg2: i32) -> (i32, i32, i32) {
    %c0_i32 = arith.constant 0 : i32
    %c0_i32_0 = arith.constant 0 : i32
    return %arg0, %arg1, %c0_i32 : i32, i32, i32
  }
}

</mosaic_0001>

<bundles_post_ra>
// kernel: vae_attention_block.2
= control target key start
LH: loop header
LB: loop body
LE: loop exit
PB: predicated region body
PF: predicated region fallthrough
CT: control target
= control target key end

     0   :  { %s1262_s18 = smov 0   ;;  %s1264_s19 = smov 0   ;;  %s1432_s0 = inlined_call_operand.vmem [shape: f32[2,64,128], index: 0, kind: input, shape index: {}]   ;;  %s1433_s1 = inlined_call_operand.vmem [shape: bf16[128,384], index: 1, kind: input, shape index: {}]   ;;  %s1434_s2 = inlined_call_operand.vmem [shape: f32[1,384], index: 2, kind: input, shape index: {}]   ;;  %s1435_s3 = inlined_call_operand.vmem [shape: bf16[2,64,128], index: 3, kind: output, shape index: {0}]   ;;  %s1436_s4 = inlined_call_operand.vmem [shape: bf16[2,64,128], index: 4, kind: output, shape index: {1}]   ;;  %s1437_s5 = inlined_call_operand.vmem [shape: bf16[2,64,128], index: 5, kind: output, shape index: {2}]  }
   0x1   :  { %s1266_s20 = smov 0  }
   0x2 LB: > { %s28_s21 = sadd.s32 1, %s1225_s19  ;;  %p958_p0 = scmp.ge.s32.totalorder %s1229_s20, 1  ;;  %s1229_s20 = sphi %s1266_s20, %s16_s20   ;;  %s1225_s19 = sphi %s1264_s19, %s1439_s19   ;;  %s1221_s18 = sphi %s1262_s18, %s1438_s18  }
   0x3   : > { %p30_p1 = scmp.ge.s32.totalorder %s28_s21, 2  ;;  %p217_p2 = scmp.lt.s32.totalorder %s1229_s20, 3 }
   0x5   : > { %s1441_s21 = smov (%p30_p1, %s28_s21), 0  ;;  %p218_p3 = pnand %p958_p0, %p217_p2 }
   0x6   : > { %p272_p4 = scmp.lt.s32.totalorder (!%p218_p3), %s1221_s18, 1 }
   0x7   : > { %221 = sbr.rel (%p218_p3) target bundleno = 273 (0x111), region = 32 }
   0xc   : > { %v1175_v0 = vld [vmem:[%s1433_s1 + $0xac] ss:$12 sps:$4 sm:$0xff]   ;;  %v1177_v1 = vld [vmem:[%s1433_s1 + $0xa8] ss:$12 sps:$4 sm:$0xff]   ;;  %v1231_v2 = vmov 0   ;;  %s1443_s18 = smov (!%p272_p4, %s1221_s18), 1  ;;  %v358_v37 = vlaneseq }
   0xd   : > { %533 = vmatprep.mubr.bf16.mxu0 %v1231_v2  ;;  %501 = vmatprep.subr.bf16.mxu0 %v1175_v0  ;;  %v1178_v3 = vld [vmem:[%s1433_s1 + $0x94] ss:$12 sps:$4 sm:$0xff]   ;;  %v1180_v4 = vld [vmem:[%s1433_s1 + $0x90] ss:$12 sps:$4 sm:$0xff]   ;;  %v1183_v7 = vld [vmem:[%s1433_s1 + $0x78] ss:$12 sps:$4 sm:$0xff]  }
   0xe   : > { %502 = vmatpush1.bf16.msra.mxu0 %v1177_v1  ;;  %v1181_v5 = vld [vmem:[%s1433_s1 + $0x7c] ss:$12 sps:$4 sm:$0xff]   ;;  %v1188_v8 = vld [vmem:[%s1433_s1 + $0x98] ss:$12 sps:$4 sm:$0xff]   ;;  %v1192_v10 = vld [vmem:[%s1433_s1 + $0x80] ss:$12 sps:$4 sm:$0xff]  }
   0xf   : > { %503 = vmatprep.subr.bf16.mxu0 %v1178_v3  ;;  %v1184_v6 = vld [vmem:[%s1433_s1 + $0xb0] ss:$12 sps:$4 sm:$0xff]   ;;  %v1187_v11 = vld [vmem:[%s1433_s1 + $0x60] ss:$12 sps:$4 sm:$0xff]   ;;  %s1017_s23 = sshll.u32 %s1443_s18, 6  ;;  %v359_v38 = vshrl.u32 %v358_v37, 7 }
  0x10   : > { %1126 = vmatprep.subr.bf16.mxu1 %v1184_v6  ;;  %v1185_v9 = vld [vmem:[%s1433_s1 + $0x64] ss:$12 sps:$4 sm:$0xff]   ;;  %v1189_v12 = vld [vmem:[%s1433_s1 + $0x4c] ss:$12 sps:$4 sm:$0xff]   ;;  %v1196_v13 = vld [vmem:[%s1433_s1 + $0x68] ss:$12 sps:$4 sm:$0xff]   ;;  %s1326_s30 = scalar_lea.vmem %s1432_s0, %s1017_s23 }
  0x11   : > { %1127 = vmatpush3.bf16.msra.mxu1 %v1184_v6  ;;  %v1191_v14 = vld [vmem:[%s1433_s1 + $0x48] ss:$12 sps:$4 sm:$0xff]   ;;  %v1200_v16 = vld [vmem:[%s1433_s1 + $0x50] ss:$12 sps:$4 sm:$0xff]   ;;  %v312_v17 = vld [vmem:[%s1326_s30] sm:$0xff]  ;;  %v360_v39 = vsub.s32 0, %v359_v38 }
  0x12   : > { %504 = vmatpush1.bf16.msra.mxu0 %v1180_v4  ;;  %1128 = vmatprep.subr.bf16.mxu1 %v1188_v8  ;;  %v1193_v15 = vld [vmem:[%s1433_s1 + $0x34] ss:$12 sps:$4 sm:$0xff]   ;;  %v313_v18 = vld [vmem:[%s1326_s30 + $0x8] sm:$0xff]  ;;  %v1195_v19 = vld [vmem:[%s1433_s1 + $0x30] ss:$12 sps:$4 sm:$0xff]   ;;  %v364_v42 = vsub.s32 1, %v359_v38 }
  0x13   : > { %505 = vmatprep.subr.bf16.mxu0 %v1181_v5  ;;  %v320_v20 = vpack.c.bf16 %v313_v18, %v312_v17  ;;  %v1197_v21 = vld [vmem:[%s1433_s1 + $0x1c] ss:$12 sps:$4 sm:$0xff]   ;;  %v1204_v22 = vld [vmem:[%s1433_s1 + $0x38] ss:$12 sps:$4 sm:$0xff]   ;;  %v1205_v25 = vld [vmem:[%s1433_s1 + $0x20] ss:$12 sps:$4 sm:$0xff]  }
  0x14   : > { %v1199_v23 = vld [vmem:[%s1433_s1 + $0x18] ss:$12 sps:$4 sm:$0xff]   ;;  %v1203_v26 = vld [vmem:[%s1433_s1] ss:$12 sps:$4 sm:$0xff]   ;;  %v1206_v27 = vld [vmem:[%s1433_s1 + $0x8] ss:$12 sps:$4 sm:$0xff]  }
  0x15   : > { %1129 = vmatpush3.bf16.msra.mxu1 %v1188_v8  ;;  %1142 = vmatprep.mubr.bf16.mxu1 %v320_v20  ;;  %v1201_v24 = vld [vmem:[%s1433_s1 + $0x4] ss:$12 sps:$4 sm:$0xff]   ;;  %v317_v29 = vld [vmem:[%s1326_s30 + $0x28] sm:$0xff]  ;;  %v315_v31 = vld [vmem:[%s1326_s30 + $0x18] sm:$0xff]  ;;  %v368_v43 = vsub.s32 2, %v359_v38 }
  0x16   : > { %506 = vmatpush1.bf16.msra.mxu0 %v1183_v7  ;;  %1130 = vmatprep.subr.bf16.mxu1 %v1192_v10  ;;  %v316_v28 = vld [vmem:[%s1326_s30 + $0x20] sm:$0xff]  ;;  %v314_v30 = vld [vmem:[%s1326_s30 + $0x10] sm:$0xff]  ;;  %v319_v35 = vld [vmem:[%s1326_s30 + $0x38] sm:$0xff] }
  0x17   : > { %507 = vmatprep.subr.bf16.mxu0 %v1185_v9  ;;  %v322_v32 = vpack.c.bf16 %v317_v29, %v316_v28  ;;  %v321_v33 = vpack.c.bf16 %v315_v31, %v314_v30  ;;  %v318_v34 = vld [vmem:[%s1326_s30 + $0x30] sm:$0xff]  ;;  %v356_v40 = vld [vmem:[%s1434_s2] sm:$0x7]  ;;  %s1018_s30 = sshll.u32 %s1443_s18, 5 }
  0x18   : > { %v323_v36 = vpack.c.bf16 %v319_v35, %v318_v34  ;;  %v1375_v41 = vrot.slane %v356_v40, %v360_v39  ;;  %v1378_v47 = vrot.slane %v356_v40, %v364_v42  ;;  %v369_v48 = vrot.slane %v356_v40, %v368_v43  ;;  %s1387_s12 = scalar_lea.vmem %s1435_s3, %s1018_s30  ;;  %s1392_s18 = scalar_lea.vmem %s1436_s4, %s1018_s30 }
  0x19   : > { %1131 = vmatpush3.bf16.msra.mxu1 %v1192_v10  ;;  %s1398_s17 = scalar_lea.vmem %s1437_s5, %s1018_s30 }
  0x1a   : > { %508 = vmatpush1.bf16.msra.mxu0 %v1187_v11  ;;  %1132 = vmatprep.subr.bf16.mxu1 %v1196_v13 }
  0x1b   : > { %509 = vmatprep.subr.bf16.mxu0 %v1189_v12 }
  0x1d   : > { %1133 = vmatpush3.bf16.msra.mxu1 %v1196_v13 }
  0x1e   : > { %510 = vmatpush1.bf16.msra.mxu0 %v1191_v14  ;;  %1134 = vmatprep.subr.bf16.mxu1 %v1200_v16 }
  0x1f   : > { %511 = vmatprep.subr.bf16.mxu0 %v1193_v15 }
  0x21   : > { %1135 = vmatpush3.bf16.msra.mxu1 %v1200_v16 }
  0x22   : > { %512 = vmatpush1.bf16.msra.mxu0 %v1195_v19  ;;  %1136 = vmatprep.subr.bf16.mxu1 %v1204_v22 }
  0x23   : > { %513 = vmatprep.subr.bf16.mxu0 %v1197_v21 }
  0x25   : > { %1137 = vmatpush3.bf16.msra.mxu1 %v1204_v22 }
  0x26   : > { %514 = vmatpush1.bf16.msra.mxu0 %v1199_v23  ;;  %1138 = vmatprep.subr.bf16.mxu1 %v1205_v25 }
  0x27   : > { %515 = vmatprep.subr.bf16.mxu0 %v1201_v24 }
  0x29   : > { %1139 = vmatpush3.bf16.msra.mxu1 %v1205_v25 }
  0x2a   : > { %516 = vmatpush1.bf16.msra.mxu0 %v1203_v26  ;;  %1140 = vmatprep.subr.bf16.mxu1 %v1206_v27 }
  0x2d   : > { %534 = vmatmul.mubr.bf16.vlgmr.msra.gmra.mxu0 %v320_v20  ;;  %1141 = vmatpush3.bf16.msra.mxu1 %v1206_v27 }
  0x2e   : > { %543 = vmatprep.mubr.bf16.mxu0 %v1231_v2 }
  0x30   : > { %1143 = vmatmul.mubr.bf16.vlgmr.msra.gmra.mxu1 %v321_v33 }
  0x31   : > { %1146 = vmatprep.mubr.bf16.mxu1 %v322_v32 }
  0x35   : > { %544 = vmatmul.mubr.bf16.gmra.mxu0 %v321_v33 }
  0x36   : > { %553 = vmatprep.mubr.bf16.mxu0 %v1231_v2 }
  0x38   : > { %1147 = vmatmul.mubr.bf16.gmra.mxu1 %v323_v36 }
  0x3d   : > { %554 = vmatmul.mubr.bf16.gmra.mxu0 %v322_v32 }
  0x3e   : > { %563 = vmatprep.mubr.bf16.mxu0 %v1231_v2 }
  0x45   : > { %564 = vmatmul.mubr.bf16.gmra.mxu0 %v323_v36 }
  0xed   : > { %v535_v44 = vpop.f32.mrf.mxu0 }
  0xee   : > { %v536_v45 = vadd.f32 %v535_v44, %v1375_v41 }
  0xef   : > { %v537_v46 = vpop.f32.mrf.mxu0 }
  0xf0   : > { %v1144_v50 = vpop.f32.mrf.mxu1  ;;  %v639_v52 = vmul.f32 0.17677669, %v536_v45  ;;  %v538_v55 = vadd.f32 %v537_v46, %v1378_v47 }
  0xf1   : > { %v539_v49 = vpop.f32.mrf.mxu0  ;;  %v617_v58 = vadd.f32 %v1144_v50, %v369_v48 }
  0xf2   : > { %v540_v51 = vadd.f32 %v539_v49, %v1375_v41  ;;  %v608_v54 = vpop.f32.mrf.mxu1 }
  0xf3   : > { %v541_v53 = vpop.f32.mrf.mxu0  ;;  %v609_v63 = vadd.f32 %v608_v54, %v369_v48 }
  0xf4   : > { %v640_v56 = vmul.f32 0.17677669, %v540_v51  ;;  %v542_v57 = vadd.f32 %v541_v53, %v1378_v47  ;;  %v1145_v60 = vpop.f32.mrf.mxu1 }
  0xf5   : > { %v545_v59 = vpop.f32.mrf.mxu0  ;;  %v620_v0 = vadd.f32 %v1145_v60, %v369_v48 }
  0xf6   : > { %v1048_v61 = vpack.c.bf16 %v640_v56, %v639_v52  ;;  %v1068_v62 = vpack.c.bf16 %v542_v57, %v538_v55  ;;  %v546_v1 = vadd.f32 %v545_v59, %v1375_v41  ;;  %v611_v3 = vpop.f32.mrf.mxu1 }
  0xf7   : > { %v547_v2 = vpop.f32.mrf.mxu0  ;;  %v1093_v4 = vpack.c.bf16 %v620_v0, %v617_v58  ;;  %v612_v5 = vadd.f32 %v611_v3, %v369_v48 }
  0xf8   : > { %1049 = vst [vmem:[%s1387_s12] sm:$0xff] %v1048_v61   ;;  %1069 = vst [vmem:[%s1392_s18] sm:$0xff] %v1068_v62   ;;  %v1148_v7 = vpop.f32.mrf.mxu1  ;;  %v641_v10 = vmul.f32 0.17677669, %v546_v1  ;;  %v548_v13 = vadd.f32 %v547_v2, %v1378_v47 }
  0xf9   : > { %v549_v6 = vpop.f32.mrf.mxu0  ;;  %1111 = vst [vmem:[%s1398_s17 + $0x8] sm:$0xff] %v1093_v4   ;;  %v1088_v9 = vpack.c.bf16 %v612_v5, %v609_v63  ;;  %v633_v16 = vadd.f32 %v1148_v7, %v369_v48 }
  0xfa   : > { %v550_v8 = vadd.f32 %v549_v6, %v1375_v41  ;;  %v624_v12 = vpop.f32.mrf.mxu1 }
  0xfb   : > { %v551_v11 = vpop.f32.mrf.mxu0  ;;  %1089 = vst [vmem:[%s1398_s17] sm:$0xff] %v1088_v9   ;;  %v625_v21 = vadd.f32 %v624_v12, %v369_v48 }
  0xfc   : > { %v642_v14 = vmul.f32 0.17677669, %v550_v8  ;;  %v552_v15 = vadd.f32 %v551_v11, %v1378_v47  ;;  %v1149_v18 = vpop.f32.mrf.mxu1 }
  0xfd   : > { %v555_v17 = vpop.f32.mrf.mxu0  ;;  %v636_v22 = vadd.f32 %v1149_v18, %v369_v48 }
  0xfe   : > { %v1053_v19 = vpack.c.bf16 %v642_v14, %v641_v10  ;;  %v1073_v20 = vpack.c.bf16 %v552_v15, %v548_v13  ;;  %v627_v24 = vpop.f32.mrf.mxu1  ;;  %v556_v25 = vadd.f32 %v555_v17, %v1375_v41 }
  0xff   : > { %v557_v23 = vpop.f32.mrf.mxu0  ;;  %v1103_v26 = vpack.c.bf16 %v636_v22, %v633_v16  ;;  %v628_v27 = vadd.f32 %v627_v24, %v369_v48 }
 0x100   : > { %1105 = vst [vmem:[%s1387_s12 + $0x8] sm:$0xff] %v1053_v19   ;;  %1108 = vst [vmem:[%s1392_s18 + $0x8] sm:$0xff] %v1073_v20   ;;  %v643_v32 = vmul.f32 0.17677669, %v556_v25  ;;  %v558_v33 = vadd.f32 %v557_v23, %v1378_v47 }
 0x101   : > { %v559_v28 = vpop.f32.mrf.mxu0  ;;  %1113 = vst [vmem:[%s1398_s17 + $0x18] sm:$0xff] %v1103_v26   ;;  %v1098_v30 = vpack.c.bf16 %v628_v27, %v625_v21 }
 0x102   : > { %v560_v29 = vadd.f32 %v559_v28, %v1375_v41 }
 0x103   : > { %v561_v31 = vpop.f32.mrf.mxu0  ;;  %1112 = vst [vmem:[%s1398_s17 + $0x10] sm:$0xff] %v1098_v30  }
 0x104   : > { %v644_v34 = vmul.f32 0.17677669, %v560_v29  ;;  %v562_v35 = vadd.f32 %v561_v31, %v1378_v47 }
 0x105   : > { %v565_v36 = vpop.f32.mrf.mxu0 }
 0x106   : > { %v1058_v37 = vpack.c.bf16 %v644_v34, %v643_v32  ;;  %v1078_v38 = vpack.c.bf16 %v562_v35, %v558_v33  ;;  %v566_v40 = vadd.f32 %v565_v36, %v1375_v41 }
 0x107   : > { %v567_v39 = vpop.f32.mrf.mxu0 }
 0x108   : > { %1106 = vst [vmem:[%s1387_s12 + $0x10] sm:$0xff] %v1058_v37   ;;  %1109 = vst [vmem:[%s1392_s18 + $0x10] sm:$0xff] %v1078_v38   ;;  %v645_v45 = vmul.f32 0.17677669, %v566_v40  ;;  %v568_v46 = vadd.f32 %v567_v39, %v1378_v47 }
 0x109   : > { %v569_v42 = vpop.f32.mrf.mxu0 }
 0x10a   : > { %v570_v43 = vadd.f32 %v569_v42, %v1375_v41 }
 0x10b   : > { %v571_v44 = vpop.f32.mrf.mxu0 }
 0x10c   : > { %v646_v48 = vmul.f32 0.17677669, %v570_v43  ;;  %v572_v49 = vadd.f32 %v571_v44, %v1378_v47 }
 0x10e   : > { %v1063_v50 = vpack.c.bf16 %v646_v48, %v645_v45  ;;  %v1083_v51 = vpack.c.bf16 %v572_v49, %v568_v46 }
 0x110   : > { %1107 = vst [vmem:[%s1387_s12 + $0x18] sm:$0xff] %v1063_v50   ;;  %1110 = vst [vmem:[%s1392_s18 + $0x18] sm:$0xff] %v1083_v51  }
 0x111 PF: > { %s16_s20 = sadd.s32 1, %s1229_s20   ;;  %s1438_s18 = smov %s1225_s19 }
 0x112   : > { %p13_p5 = scmp.ge.s32.totalorder %s16_s20, 4   ;;  %s1439_s19 = smov %s1441_s21 }
 0x114   :  { %15 = sbr.rel (!%p13_p5) target bundleno = 2 (0x2), region = 86 }

// kernel: vae_attention_block.3
= control target key start
LH: loop header
LB: loop body
LE: loop exit
PB: predicated region body
PF: predicated region fallthrough
CT: control target
= control target key end

     0   :  { %s1617_s21 = smov 0   ;;  %s1619_s22 = smov 0   ;;  %s1895_s0 = inlined_call_operand.vmem [shape: bf16[2,64,128], index: 0, kind: input, shape index: {}]   ;;  %s1896_s1 = inlined_call_operand.vmem [shape: bf16[2,64,128], index: 1, kind: input, shape index: {}]   ;;  %s1897_s2 = inlined_call_operand.vmem [shape: bf16[2,64,128], index: 2, kind: input, shape index: {}]   ;;  %s1898_s3 = inlined_call_operand.vmem [shape: f32[2,64,128], index: 3, kind: input, shape index: {}]   ;;  %s1899_s4 = inlined_call_operand.vmem [shape: bf16[128,128], index: 4, kind: input, shape index: {}]   ;;  %s1900_s5 = inlined_call_operand.vmem [shape: f32[1,128], index: 5, kind: input, shape index: {}]   ;;  %s1901_s6 = inlined_call_operand.vmem [shape: f32[2,64,128], index: 6, kind: output, shape index: {}]  }
   0x1   :  { %s1621_s23 = smov 0  }
   0x2 LB: > { %s35_s24 = sadd.s32 1, %s1573_s22  ;;  %p1331_p0 = scmp.ge.s32.totalorder %s1577_s23, 1  ;;  %s1577_s23 = sphi %s1621_s23, %s16_s23   ;;  %s1573_s22 = sphi %s1619_s22, %s1903_s22   ;;  %s1569_s21 = sphi %s1617_s21, %s1902_s21  }
   0x3   : > { %p37_p1 = scmp.ge.s32.totalorder %s35_s24, 2  ;;  %p291_p2 = scmp.lt.s32.totalorder %s1577_s23, 3 }
   0x5   : > { %s1905_s24 = smov (%p37_p1, %s35_s24), 0  ;;  %p292_p3 = pnand %p1331_p0, %p291_p2 }
   0x6   : > { %p357_p4 = scmp.lt.s32.totalorder (!%p292_p3), %s1569_s21, 1 }
   0x7   : > { %295 = sbr.rel (%p292_p3) target bundleno = 1047 (0x417), region = 44 }
   0xc   : > { %s1907_s21 = smov (!%p357_p4, %s1569_s21), 1  ;;  %vm411_vm0 = vcmask 7168   ;;  %v1579_v8 = vmov -inf   ;;  %vm573_vm1 = vcmask 523264   ;;  %v1580_v21 = vmov 0  }
   0xd   : > { %s1638_s25 = sshll.u32 %s1907_s21, 5  ;;  %414 = vst.msk [vmem:[#allocation2 + $0x10] sm:$0xff] %vm411_vm0, %v1579_v8  ;;  %412 = vst.msk [vmem:[#allocation2] sm:$0xff] %vm411_vm0, %v1579_v8  ;;  %1486 = vset.pattern.permute.xlu1 %v1580_v21  ;;  %1485 = vset.pattern.permute.xlu0 %v1580_v21  ;;  %v1581_v26 = vmov 0.0  }
   0xe   : > { %s374_s28 = scalar_lea.vmem %s1896_s1, %s1638_s25  ;;  %s364_s7 = scalar_lea.vmem %s1895_s0, %s1638_s25  ;;  %413 = vst.msk [vmem:[#allocation2 + $0x8] sm:$0xff] %vm411_vm0, %v1579_v8  ;;  %415 = vst.msk [vmem:[#allocation2 + $0x18] sm:$0xff] %vm411_vm0, %v1579_v8 }
   0xf   : > { %v1487_v0 = vld [vmem:[%s374_s28 + $0x18] sm:$0xff]   ;;  %v1488_v1 = vld [vmem:[%s374_s28 + $0x10] sm:$0xff]   ;;  %v1491_v2 = vld [vmem:[%s364_s7] sm:$0xff]   ;;  %416 = vst.msk [vmem:[#allocation2 + $0x20] sm:$0xff] %vm411_vm0, %v1579_v8  ;;  %s384_s10 = scalar_lea.vmem %s1897_s2, %s1638_s25 }
  0x10   : > { %1402 = vmatprep.subr.bf16.mxu0 %v1487_v0  ;;  %1410 = vmatprep.mubr.bf16.mxu0 %v1491_v2  ;;  %v1489_v3 = vld [vmem:[%s374_s28 + $0x8] sm:$0xff]   ;;  %v1490_v4 = vld [vmem:[%s374_s28] sm:$0xff]   ;;  %v1493_v6 = vld [vmem:[%s364_s7 + $0x10] sm:$0xff]   ;;  %417 = vst.msk [vmem:[#allocation2 + $0x28] sm:$0xff] %vm411_vm0, %v1579_v8 }
  0x11   : > { %1403 = vmatpush3.bf16.xpose.msra.mxu0 %v1487_v0  ;;  %v1492_v5 = vld [vmem:[%s364_s7 + $0x8] sm:$0xff]   ;;  %v1494_v7 = vld [vmem:[%s364_s7 + $0x18] sm:$0xff]   ;;  %418 = vst.msk [vmem:[#allocation2 + $0x30] sm:$0xff] %vm411_vm0, %v1579_v8  ;;  %419 = vst.msk [vmem:[#allocation2 + $0x38] sm:$0xff] %vm411_vm0, %v1579_v8  ;;  %s1372_s7 = sshll.u32 %s1907_s21, 6 }
  0x12   : > { %1404 = vmatprep.subr.bf16.mxu0 %v1488_v1  ;;  %420 = vst.msk [vmem:[#allocation3] sm:$0xff] %vm411_vm0, %v1581_v26  ;;  %421 = vst.msk [vmem:[#allocation3 + $0x8] sm:$0xff] %vm411_vm0, %v1581_v26  ;;  %v1495_v48 = vld [vmem:[%s384_s10 + $0x18] sm:$0xff]   ;;  %v1496_v54 = vld [vmem:[%s384_s10 + $0x10] sm:$0xff]   ;;  %s1869_s21 = scalar_lea.vmem %s1901_s6, %s1372_s7 }
  0x13   : > { %422 = vst.msk [vmem:[#allocation3 + $0x10] sm:$0xff] %vm411_vm0, %v1581_v26  ;;  %423 = vst.msk [vmem:[#allocation3 + $0x18] sm:$0xff] %vm411_vm0, %v1581_v26  ;;  %1418 = vmatprep.subr.bf16.mxu1 %v1495_v48  ;;  %v1497_v60 = vld [vmem:[%s384_s10 + $0x8] sm:$0xff]   ;;  %v1498_v62 = vld [vmem:[%s384_s10] sm:$0xff]   ;;  %s1860_s10 = scalar_lea.vmem %s1898_s3, %s1372_s7 }
  0x14   : > { %424 = vst.msk [vmem:[#allocation3 + $0x20] sm:$0xff] %vm411_vm0, %v1581_v26  ;;  %425 = vst.msk [vmem:[#allocation3 + $0x28] sm:$0xff] %vm411_vm0, %v1581_v26  ;;  %v1696_v27 = vld [vmem:[#allocation2 + $0x10] sm:$0xff]  ;;  %v1698_v29 = vld [vmem:[#allocation2] sm:$0xff]  ;;  %1419 = vmatpush3.bf16.msra.mxu1 %v1495_v48 }
  0x15   : > { %426 = vst.msk [vmem:[#allocation3 + $0x30] sm:$0xff] %vm411_vm0, %v1581_v26  ;;  %427 = vst.msk [vmem:[#allocation3 + $0x38] sm:$0xff] %vm411_vm0, %v1581_v26  ;;  %v1703_v32 = vld [vmem:[#allocation2 + $0x18] sm:$0xff]  ;;  %v1713_v36 = vld [vmem:[#allocation2 + $0x8] sm:$0xff]  ;;  %1420 = vmatprep.subr.bf16.mxu1 %v1496_v54 }
  0x16   : > { %v1731_v42 = vld [vmem:[#allocation2 + $0x20] sm:$0xff] }
  0x17   : > { %v1747_v47 = vld [vmem:[#allocation2 + $0x28] sm:$0xff] }
  0x18   : > { %v1737_v45 = vld [vmem:[#allocation2 + $0x30] sm:$0xff]  ;;  %v1759_v55 = vld [vmem:[#allocation2 + $0x38] sm:$0xff]  ;;  %1421 = vmatpush3.bf16.msra.mxu1 %v1496_v54 }
  0x19   : > { %1405 = vmatpush3.bf16.xpose.msra.mxu0 %v1488_v1  ;;  %1422 = vmatprep.subr.bf16.mxu1 %v1497_v60 }
  0x1a   : > { %1406 = vmatprep.subr.bf16.mxu0 %v1489_v3 }
  0x1c   : > { %1423 = vmatpush3.bf16.msra.mxu1 %v1497_v60 }
  0x1d   : > { %1424 = vmatprep.subr.bf16.mxu1 %v1498_v62 }
  0x20   : > { %1425 = vmatpush3.bf16.msra.mxu1 %v1498_v62 }
  0x21   : > { %1407 = vmatpush3.bf16.xpose.msra.mxu0 %v1489_v3 }
  0x22   : > { %1408 = vmatprep.subr.bf16.mxu0 %v1490_v4 }
  0x29   : > { %1409 = vmatpush3.bf16.xpose.msra.mxu0 %v1490_v4 }
  0x30   : > { %1411 = vmatmul.mubr.bf16.vlgmr.msra.gmra.mxu0 %v1492_v5 }
  0x31   : > { %1414 = vmatprep.mubr.bf16.mxu0 %v1493_v6 }
  0x38   : > { %1415 = vmatmul.mubr.bf16.gmra.mxu0 %v1494_v7 }
  0xf0   : > { %v1656_v9 = vpop.f32.mrf.mxu0 }
  0xf1   : > { %v580_v10 = vsel %vm573_vm1, %v1656_v9, -inf }
  0xf2   : > { %581 = vmax.xlane.f32.xlu1 %v580_v10  ;;  %v1660_v11 = vpop.f32.mrf.mxu0 }
  0xf3   : > { %v574_v12 = vsel %vm573_vm1, %v1660_v11, -inf }
  0xf4   : > { %575 = vmax.xlane.f32.xlu0 %v574_v12  ;;  %v1664_v13 = vpop.f32.mrf.mxu0 }
  0xf5   : > { %v583_v14 = vsel %vm573_vm1, %v1664_v13, -inf }
  0xf6   : > { %584 = vmax.xlane.f32.xlu1 %v583_v14  ;;  %v1668_v15 = vpop.f32.mrf.mxu0 }
  0xf7   : > { %v577_v16 = vsel %vm573_vm1, %v1668_v15, -inf }
  0xf8   : > { %578 = vmax.xlane.f32.xlu0 %v577_v16  ;;  %v1672_v17 = vpop.f32.mrf.mxu0 }
  0xf9   : > { %v592_v23 = vsel %vm573_vm1, %v1672_v17, -inf }
  0xfa   : > { %v1674_v18 = vpop.f32.mrf.mxu0 }
  0xfb   : > { %v586_v19 = vsel %vm573_vm1, %v1674_v18, -inf }
  0xfc   : > { %587 = vmax.xlane.f32.xlu0 %v586_v19  ;;  %v1678_v20 = vpop.f32.mrf.mxu0 }
  0xfd   : > { %v595_v25 = vsel %vm573_vm1, %v1678_v20, -inf }
  0xfe   : > { %v1680_v22 = vpop.f32.mrf.mxu0 }
  0xff   : > { %v589_v24 = vsel %vm573_vm1, %v1680_v22, -inf }
 0x100   : > { %593 = vmax.xlane.f32.xlu0 %v592_v23  ;;  %590 = vmax.xlane.f32.xlu1 %v589_v24 }
 0x104   : > { %596 = vmax.xlane.f32.xlu1 %v595_v25 }
 0x17b   : > { %v582_v28 = vpop.xlane.xlu1 %581 }
 0x17c   : > { %v1701_v30 = vmax.f32 %v1696_v27, %v582_v28 }
 0x17d   : > { %v576_v31 = vpop.xlane.xlu0 %575 }
 0x17e   : > { %v608_v33 = vsub.f32 %v1696_v27, %v1701_v30  ;;  %938 = vst.msk [vmem:[#allocation2 + $0x10] sm:$0xff] %vm411_vm0, %v1701_v30  ;;  %v1710_v34 = vmax.f32 %v1698_v29, %v576_v31  ;;  %642 = vperm.xlu1 %1486, %v1701_v30  }
 0x17f   : > { %v585_v35 = vpop.xlane.xlu1 %584 }
 0x180   : > { %v606_v37 = vsub.f32 %v1698_v29, %v1710_v34  ;;  %936 = vst.msk [vmem:[#allocation2] sm:$0xff] %vm411_vm0, %v1710_v34  ;;  %v1720_v38 = vmax.f32 %v1703_v32, %v585_v35  ;;  %632 = vperm.xlu0 %1485, %v1710_v34  }
 0x181   : > { %v579_v39 = vpop.xlane.xlu0 %578 }
 0x182   : > { %v609_v40 = vsub.f32 %v1703_v32, %v1720_v38  ;;  %939 = vst.msk [vmem:[#allocation2 + $0x18] sm:$0xff] %vm411_vm0, %v1720_v38  ;;  %v1728_v41 = vmax.f32 %v1713_v36, %v579_v39  ;;  %647 = vperm.xlu1 %1486, %v1720_v38   ;;  %v1499_v38 = vld [vmem:[%s1899_s4 + $0x38] sm:$0xff]  }
 0x183   : > { %1434 = vmatprep.subr.bf16.mxu1 %v1499_v38 }
 0x184   : > { %v607_v43 = vsub.f32 %v1713_v36, %v1728_v41  ;;  %937 = vst.msk [vmem:[#allocation2 + $0x8] sm:$0xff] %vm411_vm0, %v1728_v41  ;;  %v620_v36 = vmul.f32 1.442695, %v609_v40  ;;  %v1500_v40 = vld [vmem:[%s1899_s4 + $0x30] sm:$0xff]  }
 0x185   : > { %v588_v44 = vpop.xlane.xlu0 %587 }
 0x186   : > { %v1744_v46 = vmax.f32 %v1731_v42, %v588_v44  ;;  %637 = vperm.xlu1 %1486, %v1728_v41  }
 0x188   : > { %v610_v49 = vsub.f32 %v1731_v42, %v1744_v46  ;;  %940 = vst.msk [vmem:[#allocation2 + $0x20] sm:$0xff] %vm411_vm0, %v1744_v46  ;;  %v1501_v42 = vld [vmem:[%s1899_s4 + $0x28] sm:$0xff]  }
 0x189   : > { %v594_v50 = vpop.xlane.xlu0 %593  ;;  %v591_v51 = vpop.xlane.xlu1 %590 }
 0x18a   : > { %v1754_v52 = vmax.f32 %v1737_v45, %v594_v50  ;;  %v1757_v53 = vmax.f32 %v1747_v47, %v591_v51  ;;  %v622_v41 = vmul.f32 1.442695, %v610_v49 }
 0x18c   : > { %v612_v56 = vsub.f32 %v1737_v45, %v1754_v52  ;;  %942 = vst.msk [vmem:[#allocation2 + $0x30] sm:$0xff] %vm411_vm0, %v1754_v52  ;;  %v611_v57 = vsub.f32 %v1747_v47, %v1757_v53  ;;  %941 = vst.msk [vmem:[#allocation2 + $0x28] sm:$0xff] %vm411_vm0, %v1757_v53  ;;  %662 = vperm.xlu1 %1486, %v1754_v52   ;;  %v694_v47 = vld [vmem:[#allocation3] sm:$0xff] }
 0x18d   : > { %v597_v58 = vpop.xlane.xlu1 %596 }
 0x18e   : > { %v1771_v59 = vmax.f32 %v1759_v55, %v597_v58  ;;  %v624_v29 = vmul.f32 1.442695, %v611_v57  ;;  %v626_v49 = vmul.f32 1.442695, %v612_v56 }
 0x190   : > { %v613_v61 = vsub.f32 %v1759_v55, %v1771_v59  ;;  %943 = vst.msk [vmem:[#allocation2 + $0x38] sm:$0xff] %vm411_vm0, %v1771_v59  ;;  %652 = vperm.xlu1 %1486, %v1744_v46   ;;  %v1503_v46 = vld [vmem:[%s1899_s4 + $0x18] sm:$0xff]  }
 0x194   : > { %657 = vperm.xlu1 %1486, %v1757_v53  }
 0x198   : > { %667 = vperm.xlu1 %1486, %v1771_v59  }
 0x1f9   : > { %v643_v63 = vpop.permute.xlu1 %642 }
 0x1fa   : > { %v672_v5 = vsub.f32 %v1656_v9, %v643_v63 }
 0x1fb   : > { %v633_v0 = vpop.permute.xlu0 %632 }
 0x1fc   : > { %v670_v1 = vsub.f32 %v1660_v11, %v633_v0  ;;  %v682_v10 = vmul.f32 1.442695, %v672_v5  ;;  %v618_v5 = vmul.f32 1.442695, %v608_v33 }
 0x1fd   : > { %v648_v2 = vpop.permute.xlu1 %647 }
 0x1fe   : > { %v678_v3 = vmul.f32 1.442695, %v670_v1  ;;  %v673_v4 = vsub.f32 %v1664_v13, %v648_v2  ;;  %v616_v1 = vmul.f32 1.442695, %v607_v43  ;;  %v1502_v43 = vld [vmem:[%s1899_s4 + $0x20] sm:$0xff]  }
 0x200   : > { %1507 = vpow2.f32 %v678_v3  ;;  %v684_v6 = vmul.f32 1.442695, %v673_v4  ;;  %v614_v4 = vmul.f32 1.442695, %v606_v37 }
 0x201   : > { %v638_v7 = vpop.permute.xlu1 %637 }
 0x202   : > { %1509 = vpow2.f32 %v684_v6  ;;  %v671_v8 = vsub.f32 %v1668_v15, %v638_v7  ;;  %v697_v6 = vld [vmem:[#allocation3 + $0x18] sm:$0xff] }
 0x204   : > { %v680_v12 = vmul.f32 1.442695, %v671_v8  ;;  %v695_v8 = vld [vmem:[#allocation3 + $0x8] sm:$0xff] }
 0x206   : > { %1511 = vpow2.f32 %v680_v12 }
 0x207   : > { %1513 = vpow2.f32 %v682_v10  ;;  %v663_v14 = vpop.permute.xlu1 %662  ;;  %v628_v10 = vmul.f32 1.442695, %v613_v61 }
 0x208   : > { %v676_v16 = vsub.f32 %v1672_v17, %v663_v14 }
 0x20a   : > { %v690_v13 = vmul.f32 1.442695, %v676_v16 }
 0x20b   : > { %v653_v11 = vpop.permute.xlu1 %652 }
 0x20c   : > { %v674_v19 = vsub.f32 %v1674_v18, %v653_v11 }
 0x20d   : > { %v1508_v21 = vpop.eup %1507 }
 0x20e   : > { %v686_v23 = vmul.f32 1.442695, %v674_v19  ;;  %v710_v9 = vsel %vm573_vm1, %v1508_v21, 0.0 }
 0x20f   : > { %v1510_v24 = vpop.eup %1509  ;;  %711 = vadd.xlane.f32.xlu1 %v710_v9  ;;  %v658_v25 = vpop.permute.xlu1 %657 }
 0x210   : > { %1515 = vpow2.f32 %v686_v23  ;;  %v675_v15 = vsub.f32 %v1680_v22, %v658_v25  ;;  %v719_v28 = vsel %vm573_vm1, %v1510_v24, 0.0  ;;  %v698_v23 = vld [vmem:[#allocation3 + $0x20] sm:$0xff]  ;;  %v699_v25 = vld [vmem:[#allocation3 + $0x28] sm:$0xff] }
 0x211   : > { %1517 = vpow2.f32 %v690_v13 }
 0x212   : > { %v688_v26 = vmul.f32 1.442695, %v675_v15 }
 0x213   : > { %v1512_v31 = vpop.eup %1511  ;;  %720 = vadd.xlane.f32.xlu1 %v719_v28  ;;  %v668_v17 = vpop.permute.xlu1 %667 }
 0x214   : > { %v1514_v35 = vpop.eup %1513  ;;  %1519 = vpow2.f32 %v688_v26  ;;  %v677_v18 = vsub.f32 %v1678_v20, %v668_v17  ;;  %v713_v39 = vsel %vm573_vm1, %v1512_v31, 0.0  ;;  %v807_v44 = vpack.c.bf16 %v1512_v31, %v1508_v21  ;;  %v696_v21 = vld [vmem:[#allocation3 + $0x10] sm:$0xff] }
 0x215   : > { %714 = vadd.xlane.f32.xlu0 %v713_v39  ;;  %v808_v48 = vpack.c.bf16 %v1510_v24, %v1514_v35  ;;  %v716_v22 = vsel %vm573_vm1, %v1514_v35, 0.0  ;;  %v700_v24 = vld [vmem:[#allocation3 + $0x30] sm:$0xff]  ;;  %v701_v39 = vld [vmem:[#allocation3 + $0x38] sm:$0xff] }
 0x216   : > { %v692_v50 = vmul.f32 1.442695, %v677_v18  ;;  %1426 = vmatprep.mubr.msk.bf16.mxu1 %vm573_vm1, %v807_v44 }
 0x217   : > { %1427 = vmatmul.mubr.msk.bf16.vlgmr.msra.gmra.mxu1 %vm573_vm1, %v808_v48 }
 0x218   : > { %1521 = vpow2.f32 %v692_v50  ;;  %1435 = vmatpush3.bf16.msra.mxu1 %v1499_v38 }
 0x219   : > { %717 = vadd.xlane.f32.xlu0 %v716_v22  ;;  %1523 = vpow2.f32 %v616_v1  ;;  %1436 = vmatprep.subr.bf16.mxu1 %v1500_v40 }
 0x21a   : > { %1525 = vpow2.f32 %v614_v4 }
 0x21b   : > { %1527 = vpow2.f32 %v618_v5  ;;  %v1506_v5 = vld [vmem:[%s1899_s4] sm:$0xff]  }
 0x21c   : > { %1529 = vpow2.f32 %v620_v36  ;;  %1437 = vmatpush3.bf16.msra.mxu1 %v1500_v40 }
 0x21d   : > { %v1516_v51 = vpop.eup %1515  ;;  %1531 = vpow2.f32 %v622_v41  ;;  %1438 = vmatprep.subr.bf16.mxu1 %v1501_v42 }
 0x21e   : > { %v722_v54 = vsel %vm573_vm1, %v1516_v51, 0.0  ;;  %v1518_v58 = vpop.eup %1517  ;;  %1533 = vpow2.f32 %v624_v29 }
 0x21f   : > { %723 = vadd.xlane.f32.xlu0 %v722_v54  ;;  %v728_v60 = vsel %vm573_vm1, %v1518_v58, 0.0  ;;  %1535 = vpow2.f32 %v626_v49 }
 0x220   : > { %1439 = vmatpush3.bf16.msra.mxu1 %v1501_v42  ;;  %1537 = vpow2.f32 %v628_v10 }
 0x221   : > { %v1520_v20 = vpop.eup %1519  ;;  %1440 = vmatprep.subr.bf16.mxu1 %v1502_v43 }
 0x222   : > { %v725_v62 = vsel %vm573_vm1, %v1520_v20, 0.0  ;;  %v809_v63 = vpack.c.bf16 %v1520_v20, %v1516_v51  ;;  %v1504_v20 = vld [vmem:[%s1899_s4 + $0x10] sm:$0xff]  }
 0x223   : > { %729 = vadd.xlane.f32.xlu0 %v728_v60  ;;  %726 = vadd.xlane.f32.xlu1 %v725_v62 }
 0x224   : > { %1430 = vmatprep.mubr.msk.bf16.mxu1 %vm573_vm1, %v809_v63  ;;  %1441 = vmatpush3.bf16.msra.mxu1 %v1502_v43 }
 0x225   : > { %v1522_v0 = vpop.eup %1521  ;;  %1442 = vmatprep.subr.bf16.mxu1 %v1503_v46 }
 0x226   : > { %v731_v2 = vsel %vm573_vm1, %v1522_v0, 0.0  ;;  %v810_v3 = vpack.c.bf16 %v1522_v0, %v1518_v58  ;;  %v1524_v27 = vpop.eup %1523  ;;  %v1505_v0 = vld [vmem:[%s1899_s4 + $0x8] sm:$0xff]  }
 0x227   : > { %732 = vadd.xlane.f32.xlu1 %v731_v2  ;;  %v1526_v30 = vpop.eup %1525  ;;  %v703_v11 = vmul.f32 %v1524_v27, %v695_v8 }
 0x228   : > { %1431 = vmatmul.mubr.msk.bf16.gmra.mxu1 %vm573_vm1, %v810_v3  ;;  %v1528_v33 = vpop.eup %1527  ;;  %v702_v53 = vmul.f32 %v1526_v30, %v694_v47 }
 0x229   : > { %v1530_v34 = vpop.eup %1529  ;;  %1443 = vmatpush3.bf16.msra.mxu1 %v1503_v46  ;;  %v704_v52 = vmul.f32 %v1528_v33, %v696_v21 }
 0x22a   : > { %v1532_v32 = vpop.eup %1531  ;;  %v705_v12 = vmul.f32 %v1530_v34, %v697_v6  ;;  %1444 = vmatprep.subr.bf16.mxu1 %v1504_v20 }
 0x22b   : > { %v1534_v37 = vpop.eup %1533  ;;  %v706_v59 = vmul.f32 %v1532_v32, %v698_v23 }
 0x22c   : > { %v1536_v61 = vpop.eup %1535  ;;  %v707_v31 = vmul.f32 %v1534_v37, %v699_v25 }
 0x22d   : > { %v708_v28 = vmul.f32 %v1536_v61, %v700_v24  ;;  %v1538_v17 = vpop.eup %1537  ;;  %1445 = vmatpush3.bf16.msra.mxu1 %v1504_v20 }
 0x22e   : > { %v709_v51 = vmul.f32 %v1538_v17, %v701_v39  ;;  %1446 = vmatprep.subr.bf16.mxu1 %v1505_v0 }
 0x231   : > { %1447 = vmatpush3.bf16.msra.mxu1 %v1505_v0 }
 0x232   : > { %1448 = vmatprep.subr.bf16.mxu1 %v1506_v5 }
 0x235   : > { %1449 = vmatpush3.bf16.msra.mxu1 %v1506_v5 }
 0x238   : > { %766 = vperm.xlu1 %1486, %v1524_v27  }
 0x239   : > { %761 = vperm.xlu0 %1485, %v1526_v30  }
 0x23c   : > { %771 = vperm.xlu1 %1486, %v1528_v33  }
 0x23d   : > { %776 = vperm.xlu0 %1485, %v1530_v34  }
 0x240   : > { %781 = vperm.xlu1 %1486, %v1532_v32  }
 0x241   : > { %786 = vperm.xlu0 %1485, %v1534_v37  }
 0x298   : > { %v712_v57 = vpop.xlane.xlu1 %711 }
 0x299   : > { %v734_v7 = vadd.f32 %v712_v57, %v702_v53 }
 0x29b   : > { %743 = vst.msk [vmem:[#allocation3] sm:$0xff] %vm411_vm0, %v734_v7 }
 0x29c   : > { %v721_v14 = vpop.xlane.xlu1 %720 }
 0x29d   : > { %v737_v16 = vadd.f32 %v721_v14, %v705_v12 }
 0x29e   : > { %v715_v19 = vpop.xlane.xlu0 %714 }
 0x29f   : > { %746 = vst.msk [vmem:[#allocation3 + $0x18] sm:$0xff] %vm411_vm0, %v737_v16  ;;  %v735_v45 = vadd.f32 %v715_v19, %v703_v11 }
 0x2a1   : > { %744 = vst.msk [vmem:[#allocation3 + $0x8] sm:$0xff] %vm411_vm0, %v735_v45 }
 0x2a2   : > { %v718_v56 = vpop.xlane.xlu0 %717  ;;  %v955_v22 = vld [vmem:[#allocation3] sm:$0xff] }
 0x2a3   : > { %v736_v13 = vadd.f32 %v718_v56, %v704_v52 }
 0x2a5   : > { %745 = vst.msk [vmem:[#allocation3 + $0x10] sm:$0xff] %vm411_vm0, %v736_v13 }
 0x2a6   : > { %v958_v55 = vld [vmem:[#allocation3 + $0x18] sm:$0xff] }
 0x2a7   : > { %1539 = vrcp.f32 %v958_v55 }
 0x2a8   : > { %v724_v9 = vpop.xlane.xlu0 %723  ;;  %v956_v15 = vld [vmem:[#allocation3 + $0x8] sm:$0xff] }
 0x2a9   : > { %v738_v26 = vadd.f32 %v724_v9, %v706_v59  ;;  %1541 = vrcp.f32 %v956_v15 }
 0x2ab   : > { %747 = vst.msk [vmem:[#allocation3 + $0x20] sm:$0xff] %vm411_vm0, %v738_v26 }
 0x2ac   : > { %v730_v35 = vpop.xlane.xlu0 %729  ;;  %v727_v18 = vpop.xlane.xlu1 %726  ;;  %v957_v44 = vld [vmem:[#allocation3 + $0x10] sm:$0xff] }
 0x2ad   : > { %v740_v48 = vadd.f32 %v730_v35, %v708_v28  ;;  %v739_v50 = vadd.f32 %v727_v18, %v707_v31  ;;  %1543 = vrcp.f32 %v957_v44 }
 0x2ae   : > { %1545 = vrcp.f32 %v955_v22 }
 0x2af   : > { %749 = vst.msk [vmem:[#allocation3 + $0x30] sm:$0xff] %vm411_vm0, %v740_v48  ;;  %748 = vst.msk [vmem:[#allocation3 + $0x28] sm:$0xff] %vm411_vm0, %v739_v50 }
 0x2b0   : > { %v733_v54 = vpop.xlane.xlu1 %732 }
 0x2b1   : > { %v741_v58 = vadd.f32 %v733_v54, %v709_v51 }
 0x2b2   : > { %v959_v63 = vld [vmem:[#allocation3 + $0x20] sm:$0xff] }
 0x2b3   : > { %750 = vst.msk [vmem:[#allocation3 + $0x38] sm:$0xff] %vm411_vm0, %v741_v58 }
 0x2b4   : > { %v1540_v60 = vpop.eup %1539  ;;  %v762_v33 = vpop.permute.xlu0 %761 }
 0x2b5   : > { %988 = vperm.xlu0 %1485, %v1540_v60   ;;  %v767_v32 = vpop.permute.xlu1 %766  ;;  %v799_v10 = vmul.f32 0.0, %v762_v33 }
 0x2b6   : > { %v960_v62 = vld [vmem:[#allocation3 + $0x28] sm:$0xff]  ;;  %v1542_v1 = vpop.eup %1541  ;;  %v961_v4 = vld [vmem:[#allocation3 + $0x30] sm:$0xff]  ;;  %v800_v12 = vmul.f32 0.0, %v767_v32 }
 0x2b7   : > { %1547 = vrcp.f32 %v960_v62 }
 0x2b8   : > { %1549 = vrcp.f32 %v959_v63  ;;  %v777_v37 = vpop.permute.xlu0 %776  ;;  %v1358_v63 = vld [vmem:[%s1900_s5] ss:$0 sm:$0xff] }
 0x2b9   : > { %978 = vperm.xlu0 %1485, %v1542_v1   ;;  %v772_v42 = vpop.permute.xlu1 %771  ;;  %v802_v14 = vmul.f32 0.0, %v777_v37  ;;  %v1161_v1 = vld [vmem:[%s1860_s10 + $0x10] sm:$0xff] }
 0x2ba   : > { %v1544_v2 = vpop.eup %1543  ;;  %v962_v3 = vld [vmem:[#allocation3 + $0x38] sm:$0xff]  ;;  %v801_v6 = vmul.f32 0.0, %v772_v42  ;;  %v1165_v42 = vld [vmem:[%s1860_s10 + $0x30] sm:$0xff] }
 0x2bb   : > { %983 = vperm.xlu1 %1486, %v1544_v2   ;;  %1551 = vrcp.f32 %v962_v3  ;;  %v1546_v36 = vpop.eup %1545 }
 0x2bc   : > { %1553 = vrcp.f32 %v961_v4  ;;  %v787_v43 = vpop.permute.xlu0 %786  ;;  %v1159_v4 = vld [vmem:[%s1860_s10] sm:$0xff] }
 0x2bd   : > { %796 = vperm.xlu0 %1485, %v1538_v17   ;;  %v782_v53 = vpop.permute.xlu1 %781  ;;  %v804_v15 = vmul.f32 0.0, %v787_v43 }
 0x2be   : > { %v803_v26 = vmul.f32 0.0, %v782_v53 }
 0x2bf   : > { %973 = vperm.xlu1 %1486, %v1546_v36  }
 0x2c3   : > { %791 = vperm.xlu1 %1486, %v1536_v61  }
 0x2c4   : > { %v1548_v41 = vpop.eup %1547 }
 0x2c5   : > { %998 = vperm.xlu0 %1485, %v1548_v41   ;;  %v1550_v29 = vpop.eup %1549 }
 0x2c7   : > { %993 = vperm.xlu1 %1486, %v1550_v29   ;;  %v1162_v29 = vld [vmem:[%s1860_s10 + $0x18] sm:$0xff] }
 0x2c8   : > { %v1552_v27 = vpop.eup %1551 }
 0x2c9   : > { %1008 = vperm.xlu0 %1485, %v1552_v27   ;;  %v1554_v30 = vpop.eup %1553 }
 0x2cb   : > { %1003 = vperm.xlu1 %1486, %v1554_v30  }
 0x2d7   : > { %v1428_v34 = vpop.f32.mrf.mxu1 }
 0x2d8   : > { %v922_v16 = vadd.f32 %v1428_v34, %v801_v6  ;;  %v1160_v34 = vld [vmem:[%s1860_s10 + $0x8] sm:$0xff]  ;;  %v1166_v6 = vld [vmem:[%s1860_s10 + $0x38] sm:$0xff] }
 0x2d9   : > { %v889_v38 = vpop.f32.mrf.mxu1 }
 0x2da   : > { %v920_v11 = vadd.f32 %v889_v38, %v799_v10 }
 0x2db   : > { %v1429_v40 = vpop.f32.mrf.mxu1 }
 0x2dc   : > { %v923_v21 = vadd.f32 %v1429_v40, %v802_v14 }
 0x2dd   : > { %v892_v46 = vpop.f32.mrf.mxu1 }
 0x2de   : > { %v921_v19 = vadd.f32 %v892_v46, %v800_v12  ;;  %v1164_v12 = vld [vmem:[%s1860_s10 + $0x28] sm:$0xff] }
 0x2e8   : > { %v1432_v49 = vpop.f32.mrf.mxu1 }
 0x2ea   : > { %v905_v57 = vpop.f32.mrf.mxu1 }
 0x2eb   : > { %v924_v31 = vadd.f32 %v905_v57, %v803_v26 }
 0x2ec   : > { %v1433_v45 = vpop.f32.mrf.mxu1 }
 0x2ee   : > { %v908_v9 = vpop.f32.mrf.mxu1 }
 0x2ef   : > { %v925_v17 = vadd.f32 %v908_v9, %v804_v15 }
 0x330   : > { %v989_v47 = vpop.permute.xlu0 %988 }
 0x331   : > { %v1014_v55 = vmul.f32 %v989_v47, %v923_v21  ;;  %v1163_v47 = vld [vmem:[%s1860_s10 + $0x20] sm:$0xff] }
 0x334   : > { %v979_v7 = vpop.permute.xlu0 %978 }
 0x335   : > { %v1012_v13 = vmul.f32 %v979_v7, %v921_v19 }
 0x336   : > { %v984_v8 = vpop.permute.xlu1 %983 }
 0x337   : > { %v1013_v52 = vmul.f32 %v984_v8, %v922_v16 }
 0x338   : > { %v797_v59 = vpop.permute.xlu0 %796 }
 0x339   : > { %v1020_v24 = vpack.c.bf16 %v1014_v55, %v1013_v52  ;;  %v806_v35 = vmul.f32 0.0, %v797_v59 }
 0x33a   : > { %v974_v56 = vpop.permute.xlu1 %973 }
 0x33b   : > { %v1011_v23 = vmul.f32 %v974_v56, %v920_v11  ;;  %v927_v51 = vadd.f32 %v1433_v45, %v806_v35 }
 0x33d   : > { %v1019_v61 = vpack.c.bf16 %v1012_v13, %v1011_v23 }
 0x33e   : > { %v792_v25 = vpop.permute.xlu1 %791 }
 0x33f   : > { %1450 = vmatprep.mubr.bf16.mxu1 %v1019_v61  ;;  %v805_v18 = vmul.f32 0.0, %v792_v25 }
 0x340   : > { %v999_v28 = vpop.permute.xlu0 %998  ;;  %1451 = vmatmul.mubr.bf16.vlgmr.msra.gmra.mxu1 %v1020_v24 }
 0x341   : > { %v1016_v44 = vmul.f32 %v999_v28, %v925_v17  ;;  %v926_v54 = vadd.f32 %v1432_v49, %v805_v18 }
 0x342   : > { %v994_v39 = vpop.permute.xlu1 %993 }
 0x343   : > { %v1015_v48 = vmul.f32 %v994_v39, %v924_v31 }
 0x344   : > { %v1009_v50 = vpop.permute.xlu0 %1008 }
 0x345   : > { %v1021_v22 = vpack.c.bf16 %v1016_v44, %v1015_v48  ;;  %v1018_v20 = vmul.f32 %v1009_v50, %v927_v51 }
 0x346   : > { %v1004_v58 = vpop.permute.xlu1 %1003 }
 0x347   : > { %v1017_v60 = vmul.f32 %v1004_v58, %v926_v54  ;;  %1454 = vmatprep.mubr.bf16.mxu1 %v1021_v22 }
 0x349   : > { %v1022_v62 = vpack.c.bf16 %v1018_v20, %v1017_v60 }
 0x34b   : > { %1455 = vmatmul.mubr.bf16.gmra.mxu1 %v1022_v62 }
 0x400   : > { %v1452_v0 = vpop.f32.mrf.mxu1 }
 0x401   : > { %v1137_v2 = vadd.f32 %v1452_v0, %v1358_v63 }
 0x402   : > { %v1128_v3 = vpop.f32.mrf.mxu1 }
 0x403   : > { %v1169_v5 = vadd.f32 %v1161_v1, %v1137_v2  ;;  %v1129_v36 = vadd.f32 %v1358_v63, %v1128_v3 }
 0x404   : > { %v1453_v41 = vpop.f32.mrf.mxu1 }
 0x405   : > { %1177 = vst [vmem:[%s1869_s21 + $0x10] sm:$0xff] %v1169_v5  ;;  %v1167_v27 = vadd.f32 %v1159_v4, %v1129_v36  ;;  %v1140_v30 = vadd.f32 %v1453_v41, %v1358_v63 }
 0x406   : > { %v1131_v33 = vpop.f32.mrf.mxu1 }
 0x407   : > { %1175 = vst [vmem:[%s1869_s21] sm:$0xff] %v1167_v27  ;;  %v1170_v32 = vadd.f32 %v1162_v29, %v1140_v30  ;;  %v1132_v37 = vadd.f32 %v1358_v63, %v1131_v33 }
 0x409   : > { %1178 = vst [vmem:[%s1869_s21 + $0x18] sm:$0xff] %v1170_v32  ;;  %v1168_v38 = vadd.f32 %v1160_v34, %v1132_v37 }
 0x40b   : > { %1176 = vst [vmem:[%s1869_s21 + $0x8] sm:$0xff] %v1168_v38  ;;  %v1456_v40 = vpop.f32.mrf.mxu1 }
 0x40c   : > { %v1153_v43 = vadd.f32 %v1456_v40, %v1358_v63 }
 0x40d   : > { %v1144_v46 = vpop.f32.mrf.mxu1 }
 0x40e   : > { %v1173_v49 = vadd.f32 %v1165_v42, %v1153_v43  ;;  %v1145_v53 = vadd.f32 %v1358_v63, %v1144_v46 }
 0x40f   : > { %v1457_v57 = vpop.f32.mrf.mxu1 }
 0x410   : > { %1181 = vst [vmem:[%s1869_s21 + $0x30] sm:$0xff] %v1173_v49  ;;  %v1171_v7 = vadd.f32 %v1163_v47, %v1145_v53  ;;  %v1156_v8 = vadd.f32 %v1457_v57, %v1358_v63 }
 0x411   : > { %v1147_v10 = vpop.f32.mrf.mxu1 }
 0x412   : > { %1179 = vst [vmem:[%s1869_s21 + $0x20] sm:$0xff] %v1171_v7  ;;  %v1174_v14 = vadd.f32 %v1166_v6, %v1156_v8  ;;  %v1148_v16 = vadd.f32 %v1358_v63, %v1147_v10 }
 0x414   : > { %1182 = vst [vmem:[%s1869_s21 + $0x38] sm:$0xff] %v1174_v14  ;;  %v1172_v11 = vadd.f32 %v1164_v12, %v1148_v16 }
 0x416   : > { %1180 = vst [vmem:[%s1869_s21 + $0x28] sm:$0xff] %v1172_v11 }
 0x417 PF: > { %s16_s23 = sadd.s32 1, %s1577_s23   ;;  %s1902_s21 = smov %s1573_s22 }
 0x418   : > { %p13_p5 = scmp.ge.s32.totalorder %s16_s23, 4   ;;  %s1903_s22 = smov %s1905_s24 }
 0x41a   :  { %15 = sbr.rel (!%p13_p5) target bundleno = 2 (0x2), region = 91 }

</bundles_post_ra>
